<compile_context>
chip_gen: v5e
topology: v5e:2x2
jax: 0.10.0
libtpu: 0.0.40
codegen_flags: <defaults>
</compile_context>

<pallas_src>
import functools
import math

import jax
import jax.numpy as jnp
from jax import lax
from jax.experimental import pallas as pl
from jax.experimental.pallas import tpu as pltpu


def _round_up(x, m):
    return (x + m - 1) // m * m


# --------------------------------------------------------------------------
# Fused GEMM kernels: out = [relu]( (A @ B) * scale + bias [+ residual] )
#   A: (tm, K) bf16, B: (K, tn) bf16 -> f32 accumulation on the MXU, f32 epilogue.
# --------------------------------------------------------------------------

def _gemm_kernel(a_ref, b_ref, s_ref, c_ref, o_ref, *, relu):
    y = jnp.dot(a_ref[...], b_ref[...], preferred_element_type=jnp.float32)
    y = y * s_ref[...] + c_ref[...]
    if relu:
        y = jnp.maximum(y, 0.0)
    o_ref[...] = y.astype(o_ref.dtype)


def _gemm_res_kernel(a_ref, b_ref, s_ref, c_ref, r_ref, o_ref):
    y = jnp.dot(a_ref[...], b_ref[...], preferred_element_type=jnp.float32)
    y = y * s_ref[...] + c_ref[...] + r_ref[...].astype(jnp.float32)
    o_ref[...] = jnp.maximum(y, 0.0).astype(o_ref.dtype)


def _pick_tile(dim_p, pref=256):
    # 256 keeps double-buffered full-K bf16 blocks well under v5e's scoped VMEM,
    # while leaving >=2 grid blocks on big layers for v7x's two TensorCores.
    return pref if dim_p % pref == 0 else 128


@functools.partial(jax.jit, static_argnames=("relu", "out_dtype"))
def _gemm_impl(a, b, scale, bias, residual, *, relu, out_dtype):
    M, K = a.shape
    K2, N = b.shape
    assert K == K2
    Mp, Kp, Np = _round_up(M, 128), _round_up(K, 128), _round_up(N, 128)
    tm, tn = _pick_tile(Mp), _pick_tile(Np)
    a_p = jnp.pad(a.astype(jnp.bfloat16), ((0, Mp - M), (0, Kp - K)))
    b_p = jnp.pad(b.astype(jnp.bfloat16), ((0, Kp - K), (0, Np - N)))
    s_p = jnp.pad(scale.reshape(1, N).astype(jnp.float32), ((0, 0), (0, Np - N)))
    c_p = jnp.pad(bias.reshape(1, N).astype(jnp.float32), ((0, 0), (0, Np - N)))
    args = [a_p, b_p, s_p, c_p]
    in_specs = [pl.BlockSpec((tm, Kp), lambda i, j: (i, 0)),   # full-K: no k axis
                pl.BlockSpec((Kp, tn), lambda i, j: (0, j)),
                pl.BlockSpec((1, tn), lambda i, j: (0, j)),
                pl.BlockSpec((1, tn), lambda i, j: (0, j))]
    if residual is not None:
        r_p = jnp.pad(residual, ((0, Mp - M), (0, Np - N)))
        args.append(r_p)
        in_specs.append(pl.BlockSpec((tm, tn), lambda i, j: (i, j)))
        kernel = _gemm_res_kernel
    else:
        kernel = functools.partial(_gemm_kernel, relu=relu)
    out = pl.pallas_call(
        kernel,
        out_shape=jax.ShapeDtypeStruct((Mp, Np), out_dtype),
        grid=(Mp // tm, Np // tn),
        in_specs=in_specs,
        out_specs=pl.BlockSpec((tm, tn), lambda i, j: (i, j)),
        compiler_params=pltpu.CompilerParams(
            dimension_semantics=("parallel", "parallel"),
            vmem_limit_bytes=48 * 1024 * 1024),
    )(*args)
    return out[:M, :N]


def pallas_gemm(a, b, scale=None, bias=None, residual=None, relu=False,
                out_dtype=jnp.float32):
    N = b.shape[1]
    if scale is None:
        scale = jnp.ones((N,), jnp.float32)
    if bias is None:
        bias = jnp.zeros((N,), jnp.float32)
    return _gemm_impl(a, b, scale, bias, residual, relu=relu, out_dtype=out_dtype)


# --------------------------------------------------------------------------
# Fused GRU recurrence: one kernel per layer; h, W_hh, b_hh stay VMEM-resident.
#   gi:  (T, Bp, 3*Hp) f32  -- precomputed x @ W_ih^T + b_ih, gate-padded columns
#   whh: (Hp, 3*Hp)    f32  -- W_hh^T with gate-padded cols and zero-padded rows
#   bhh: (1, 3*Hp)     f32
#   out: (T, Bp, Hp)   f32  -- h_t for every timestep (next layer needs them all)
# Gate math kept in f32 (v5e VPU/EUP have no bf16 path); padded lanes stay zero.
# --------------------------------------------------------------------------

def _gru_scan_kernel(gi_ref, whh_ref, bhh_ref, o_ref):
    T, Bp, _ = gi_ref.shape
    Hp = o_ref.shape[2]

    def step(t, h):
        gh = jnp.dot(h, whh_ref[...], preferred_element_type=jnp.float32) + bhh_ref[...]
        gi = gi_ref[t]
        r = jax.nn.sigmoid(gi[:, :Hp] + gh[:, :Hp])
        z = jax.nn.sigmoid(gi[:, Hp:2 * Hp] + gh[:, Hp:2 * Hp])
        n = jnp.tanh(gi[:, 2 * Hp:] + r * gh[:, 2 * Hp:])
        h_new = (1.0 - z) * n + z * h
        o_ref[t] = h_new
        return h_new

    lax.fori_loop(0, T, step, jnp.zeros((Bp, Hp), jnp.float32), unroll=T <= 8)


@jax.jit
def pallas_gru_scan(gi, whh, bhh):
    T, Bp, three_hp = gi.shape
    Hp = three_hp // 3
    return pl.pallas_call(
        _gru_scan_kernel,
        out_shape=jax.ShapeDtypeStruct((T, Bp, Hp), jnp.float32),
    )(gi, whh, bhh)


# --------------------------------------------------------------------------
# Glue (im2col, pooling, network wiring) — plain JAX feeding the Pallas kernels
# --------------------------------------------------------------------------

def conv_bn(x, conv, stride, padding, relu, residual=None, out_dtype=jnp.bfloat16):
    """x: (N, H, W, C); conv: {'w_mat': (kh*kw*C, OC) bf16, 'kh', 'kw',
    'bn_scale', 'bn_bias'}.  im2col (bf16) + fused GEMM/BN/ReLU(+residual)."""
    # TODO(synk): full implicit-GEMM (patch extraction inside the matmul kernel via
    # index_maps / manual DMA) would remove the patch materialization entirely.
    N, H, W, C = x.shape
    kh, kw = conv["kh"], conv["kw"]
    OC = conv["w_mat"].shape[1]
    OH = (H + 2 * padding - kh) // stride + 1
    OW = (W + 2 * padding - kw) // stride + 1
    xb = x.astype(jnp.bfloat16)                       # emit patches directly in bf16
    if padding:
        xb = jnp.pad(xb, ((0, 0), (padding, padding), (padding, padding), (0, 0)))
    cols = [xb[:, i:i + stride * (OH - 1) + 1:stride,
               j:j + stride * (OW - 1) + 1:stride, :]
            for i in range(kh) for j in range(kw)]
    patches = cols[0] if len(cols) == 1 else jnp.concatenate(cols, axis=-1)
    patches = patches.reshape(N * OH * OW, kh * kw * C)
    res2d = None if residual is None else residual.reshape(N * OH * OW, OC)
    out = pallas_gemm(patches, conv["w_mat"], scale=conv["bn_scale"],
                      bias=conv["bn_bias"], residual=res2d, relu=relu,
                      out_dtype=out_dtype)
    return out.reshape(N, OH, OW, OC)


def maxpool2d(x, k=3, stride=2, padding=1):
    # TODO(synk): pooling window max kept in plain-JAX glue (bandwidth-trivial here).
    N, H, W, C = x.shape
    OH = (H + 2 * padding - k) // stride + 1
    OW = (W + 2 * padding - k) // stride + 1
    xp = jnp.pad(x, ((0, 0), (padding, padding), (padding, padding), (0, 0)),
                 constant_values=-jnp.inf)
    cols = [xp[:, i:i + stride * (OH - 1) + 1:stride,
               j:j + stride * (OW - 1) + 1:stride, :]
            for i in range(k) for j in range(k)]
    return jnp.max(jnp.stack(cols, axis=0), axis=0)


def basic_block(x, blk):
    stride = blk["stride"]
    out = conv_bn(x, blk["conv1"], stride, 1, relu=True)
    if "downsample" in blk:
        identity = conv_bn(x, blk["downsample"], stride, 0, relu=False)
    else:
        identity = x
    # conv2 + bn2 + residual add + ReLU fused into one GEMM epilogue.
    return conv_bn(out, blk["conv2"], 1, 1, relu=True, residual=identity)


def resnet18_features(x, params):
    x = conv_bn(x, params["conv1"], 2, 3, relu=True)
    x = maxpool2d(x, 3, 2, 1)
    for name in ("layer1", "layer2", "layer3", "layer4"):
        for blk in params[name]:
            x = basic_block(x, blk)
    # AdaptiveAvgPool2d((1,1)) == mean over spatial dims.
    # TODO(synk): global average pool kept in plain-JAX glue (tiny reduction).
    return jnp.mean(x.astype(jnp.float32), axis=(1, 2))   # (N, 512)


def gru_forward(x, gru_params):
    """x: (B, T, feat) -> (B, T, hidden); nn.GRU semantics (batch_first, h0 = 0)."""
    B, T, _ = x.shape
    Bp = _round_up(B, 8)
    layer_in = x
    for lp in gru_params:
        Hd, Hp = lp["hidden"], lp["Hp"]
        # Input projection for ALL timesteps in one GEMM; b_ih fused in the epilogue.
        gi = pallas_gemm(layer_in.reshape(B * T, -1), lp["W_ih_T_pad"],
                         bias=lp["b_ih_pad"])                         # (B*T, 3*Hp)
        gi = gi.reshape(B, T, 3 * Hp).transpose(1, 0, 2)              # (T, B, 3*Hp)
        gi = jnp.pad(gi, ((0, 0), (0, Bp - B), (0, 0)))
        out = pallas_gru_scan(gi, lp["W_hh_T_pad"], lp["b_hh_pad"])   # (T, Bp, Hp)
        layer_in = out[:, :B, :Hd].transpose(1, 0, 2)                 # (B, T, Hd)
    return layer_in


def resnet18_gru_forward(x, params):
    """x: (B, T, C, H, W) float32 (NCHW frames) -> (B, num_classes)."""
    B, T, C, H, W = x.shape
    frames = x.reshape(B * T, C, H, W).transpose(0, 2, 3, 1)   # -> NHWC
    feats = resnet18_features(frames, params)                  # (B*T, 512)
    feats = feats.reshape(B, T, -1)
    gru_out = gru_forward(feats, params["gru"])                # (B, T, hidden)
    last = gru_out[:, -1, :]
    logits = pallas_gemm(last, params["fc_w_t"], bias=params["fc_b"])
    return logits


# --------------------------------------------------------------------------
# Deterministic parameter init (synthetic, not a checkpoint).  Weights are
# pre-flattened / pre-transposed / pre-cast to bf16 once; BN folded to scale/bias.
# --------------------------------------------------------------------------

def _conv_weight(key, kh, kw, cin, cout):
    fan_in = kh * kw * cin
    w = jax.random.normal(key, (kh, kw, cin, cout), jnp.float32) * math.sqrt(2.0 / fan_in)
    return w.reshape(kh * kw * cin, cout).astype(jnp.bfloat16)


def _bn_fold(key, c):
    k1, k2, k3, k4 = jax.random.split(key, 4)
    gamma = 1.0 + 0.1 * jax.random.normal(k1, (c,), jnp.float32)
    beta = 0.1 * jax.random.normal(k2, (c,), jnp.float32)
    mean = 0.1 * jax.random.normal(k3, (c,), jnp.float32)
    var = jax.random.uniform(k4, (c,), jnp.float32, 0.5, 1.5)
    scale = gamma / jnp.sqrt(var + 1e-5)
    bias = beta - mean * scale
    return scale, bias


def make_conv_bn(key, kh, kw, cin, cout):
    kc, kb = jax.random.split(key)
    scale, bias = _bn_fold(kb, cout)
    return {"w_mat": _conv_weight(kc, kh, kw, cin, cout), "kh": kh, "kw": kw,
            "bn_scale": scale, "bn_bias": bias}


def make_gru_layer(key, input_size, hidden):
    Hp = _round_up(hidden, 128)
    bound = 1.0 / math.sqrt(hidden)
    k1, k2, k3, k4 = jax.random.split(key, 4)
    u = lambda k, shp: jax.random.uniform(k, shp, jnp.float32, -bound, bound)
    W_ih = u(k1, (3 * hidden, input_size))      # PyTorch layout: rows = (r | z | n)
    W_hh = u(k2, (3 * hidden, hidden))
    b_ih = u(k3, (3 * hidden,))
    b_hh = u(k4, (3 * hidden,))

    def pad_gate_cols(w_t):                     # (rows, 3H) -> (rows, 3*Hp), per gate
        rows = w_t.shape[0]
        w3 = w_t.reshape(rows, 3, hidden)
        return jnp.pad(w3, ((0, 0), (0, 0), (0, Hp - hidden))).reshape(rows, 3 * Hp)

    W_ih_T_pad = pad_gate_cols(W_ih.T).astype(jnp.bfloat16)                  # (in, 3Hp)
    W_hh_T_pad = jnp.pad(pad_gate_cols(W_hh.T), ((0, Hp - hidden), (0, 0)))  # (Hp, 3Hp)
    b_ih_pad = jnp.pad(b_ih.reshape(3, hidden),
                       ((0, 0), (0, Hp - hidden))).reshape(3 * Hp)
    b_hh_pad = jnp.pad(b_hh.reshape(3, hidden),
                       ((0, 0), (0, Hp - hidden))).reshape(1, 3 * Hp)
    return {"hidden": hidden, "Hp": Hp,
            "W_ih_T_pad": W_ih_T_pad, "b_ih_pad": b_ih_pad,
            "W_hh_T_pad": W_hh_T_pad, "b_hh_pad": b_hh_pad}


def init_params(key, num_classes=100, hidden_dim=20):
    kit = iter(jax.random.split(key, 64))
    nk = lambda: next(kit)
    params = {"conv1": make_conv_bn(nk(), 7, 7, 3, 64)}

    def make_block(cin, cout, stride):
        blk = {"conv1": make_conv_bn(nk(), 3, 3, cin, cout),
               "conv2": make_conv_bn(nk(), 3, 3, cout, cout),
               "stride": stride}
        if stride != 1 or cin != cout:
            blk["downsample"] = make_conv_bn(nk(), 1, 1, cin, cout)
        return blk

    for name, cin, cout, stride in [("layer1", 64, 64, 1), ("layer2", 64, 128, 2),
                                    ("layer3", 128, 256, 2), ("layer4", 256, 512, 2)]:
        params[name] = [make_block(cin, cout, stride), make_block(cout, cout, 1)]

    feat_dim = 512
    params["gru"] = [make_gru_layer(nk(), feat_dim, hidden_dim),
                     make_gru_layer(nk(), hidden_dim, hidden_dim)]
    bound = 1.0 / math.sqrt(hidden_dim)
    params["fc_w_t"] = jax.random.uniform(nk(), (hidden_dim, num_classes),
                                          jnp.float32, -bound, bound).astype(jnp.bfloat16)
    params["fc_b"] = jax.random.uniform(nk(), (num_classes,),
                                        jnp.float32, -bound, bound)
    return params


# --------------------------------------------------------------------------

if __name__ == "__main__":
    B, T, C, H, W = 2, 3, 3, 16, 16        # small but ResNet18-compatible shapes
    key = jax.random.PRNGKey(0)
    pkey, xkey = jax.random.split(key)
    params = init_params(pkey, num_classes=100, hidden_dim=20)
    x = jax.random.normal(xkey, (B, T, C, H, W), jnp.float32)

    logits = resnet18_gru_forward(x, params)
    logits = jax.block_until_ready(logits)

    assert logits.shape == (B, 100), logits.shape
    assert bool(jnp.all(jnp.isfinite(logits)))
    print("KERNEL_OK")
</pallas_src>

<mosaic_0001>
module attributes {stable_mosaic.version = 11 : i64} {
  func.func @_gemm_kernel(%arg0: i32, %arg1: i32, %arg2: memref<128x256xbf16, #tpu.memory_space<vmem>>, %arg3: memref<256x128xbf16, #tpu.memory_space<vmem>>, %arg4: memref<1x128xf32, #tpu.memory_space<vmem>>, %arg5: memref<1x128xf32, #tpu.memory_space<vmem>>, %arg6: memref<128x128xbf16, #tpu.memory_space<vmem>>) attributes {dimension_semantics = [#tpu.dimension_semantics<parallel>, #tpu.dimension_semantics<parallel>], iteration_bounds = array<i64: 3, 1>, scalar_prefetch = 0 : i64, scratch_operands = 0 : i64, tpu.core_type = #tpu.core_type<tc>, window_params = [{transform_indices = @transform_0, window_bounds = array<i64: 128, 256>}, {transform_indices = @transform_1, window_bounds = array<i64: 256, 128>}, {transform_indices = @transform_2, window_bounds = array<i64: 1, 128>}, {transform_indices = @transform_3, window_bounds = array<i64: 1, 128>}, {transform_indices = @transform_4, window_bounds = array<i64: 128, 128>}]} {
    %c0 = arith.constant 0 : index
    %c0_0 = arith.constant 0 : index
    %0 = vector.load %arg2[%c0, %c0_0] : memref<128x256xbf16, #tpu.memory_space<vmem>>, vector<128x256xbf16>
    %c0_1 = arith.constant 0 : index
    %c0_2 = arith.constant 0 : index
    %1 = vector.load %arg3[%c0_1, %c0_2] : memref<256x128xbf16, #tpu.memory_space<vmem>>, vector<256x128xbf16>
    %cst = arith.constant dense<0.000000e+00> : vector<128x128xf32>
    %2 = tpu.matmul %0, %1, %cst {dimension_numbers = #tpu.dot_dimension_numbers<[1], [0], [0], [1], [0, 0, 1, 1], [], []>} : vector<128x256xbf16>, vector<256x128xbf16>, vector<128x128xf32> -> vector<128x128xf32>
    %c0_3 = arith.constant 0 : index
    %c0_4 = arith.constant 0 : index
    %3 = vector.load %arg4[%c0_3, %c0_4] : memref<1x128xf32, #tpu.memory_space<vmem>>, vector<1x128xf32>
    %4 = vector.broadcast %3 : vector<1x128xf32> to vector<128x128xf32>
    %5 = arith.mulf %2, %4 : vector<128x128xf32>
    %c0_5 = arith.constant 0 : index
    %c0_6 = arith.constant 0 : index
    %6 = vector.load %arg5[%c0_5, %c0_6] : memref<1x128xf32, #tpu.memory_space<vmem>>, vector<1x128xf32>
    %7 = vector.broadcast %6 : vector<1x128xf32> to vector<128x128xf32>
    %8 = arith.addf %5, %7 : vector<128x128xf32>
    %cst_7 = arith.constant 0.000000e+00 : f32
    %9 = vector.broadcast %cst_7 : f32 to vector<128x128xf32>
    %10 = arith.maximumf %8, %9 : vector<128x128xf32>
    %11 = arith.truncf %10 : vector<128x128xf32> to vector<128x128xbf16>
    %c0_8 = arith.constant 0 : index
    %c0_9 = arith.constant 0 : index
    %12 = vector.load %arg6[%c0_8, %c0_9] : memref<128x128xbf16, #tpu.memory_space<vmem>>, vector<128x128xbf16>
    tpu.vector_store %arg6[%c0_8, %c0_9], %11 {strides = array<i32>} : memref<128x128xbf16, #tpu.memory_space<vmem>>, vector<128x128xbf16>,
    return
  }
  func.func @transform_0(%arg0: i32, %arg1: i32) -> (i32, i32) {
    %c0_i32 = arith.constant 0 : i32
    %c0_i32_0 = arith.constant 0 : i32
    return %arg0, %c0_i32 : i32, i32
  }
  func.func @transform_1(%arg0: i32, %arg1: i32) -> (i32, i32) {
    %c0_i32 = arith.constant 0 : i32
    %c0_i32_0 = arith.constant 0 : i32
    return %c0_i32, %arg1 : i32, i32
  }
  func.func @transform_2(%arg0: i32, %arg1: i32) -> (i32, i32) {
    %c0_i32 = arith.constant 0 : i32
    %c0_i32_0 = arith.constant 0 : i32
    return %c0_i32, %arg1 : i32, i32
  }
  func.func @transform_3(%arg0: i32, %arg1: i32) -> (i32, i32) {
    %c0_i32 = arith.constant 0 : i32
    %c0_i32_0 = arith.constant 0 : i32
    return %c0_i32, %arg1 : i32, i32
  }
  func.func @transform_4(%arg0: i32, %arg1: i32) -> (i32, i32) {
    %c0_i32 = arith.constant 0 : i32
    return %arg0, %arg1 : i32, i32
  }
}

</mosaic_0001>

<bundles_post_ra>
// kernel: _gemm_impl.1
= control target key start
LH: loop header
LB: loop body
LE: loop exit
PB: predicated region body
PF: predicated region fallthrough
CT: control target
= control target key end

     0   :  { %s1107_s15 = smov 0   ;;  %s1109_s16 = smov 0   ;;  %s1281_s0 = inlined_call_operand.vmem [shape: bf16[384,256], index: 0, kind: input, shape index: {}]   ;;  %s1282_s1 = inlined_call_operand.vmem [shape: bf16[256,128], index: 1, kind: input, shape index: {}]   ;;  %s1283_s2 = inlined_call_operand.vmem [shape: f32[1,128], index: 2, kind: input, shape index: {}]   ;;  %s1284_s3 = inlined_call_operand.vmem [shape: f32[1,128], index: 3, kind: input, shape index: {}]   ;;  %s1285_s4 = inlined_call_operand.vmem [shape: bf16[384,128], index: 4, kind: output, shape index: {}]  }
   0x1   :  { %s1111_s17 = smov 0  }
   0x2 LB: > { %s26_s18 = sadd.s32 1, %s1076_s16  ;;  %p800_p0 = scmp.ge.s32.totalorder %s1080_s17, 1  ;;  %s1080_s17 = sphi %s1111_s17, %s14_s17   ;;  %s1076_s16 = sphi %s1109_s16, %s1287_s16   ;;  %s1072_s15 = sphi %s1107_s15, %s1286_s15  }
   0x3   : > { %p28_p1 = scmp.ge.s32.totalorder %s26_s18, 3  ;;  %p203_p2 = scmp.lt.s32.totalorder %s1080_s17, 4 }
   0x5   : > { %s1289_s18 = smov (%p28_p1, %s26_s18), 0  ;;  %p204_p3 = pnand %p800_p0, %p203_p2 }
   0x6   : > { %s801_s5 = sshll.u32 (!%p204_p3), %s1072_s15, 4 }
   0x7   : > { %207 = sbr.rel (%p204_p3) target bundleno = 244 (0xf4), region = 36  ;;  %p244_p4 = scmp.lt.s32.totalorder (!%p204_p3), %s801_s5, 47 }
   0xc   : > { %v960_v0 = vld [vmem:[%s1282_s1 + $0x38] sm:$0xff]  ;;  %v959_v2 = vld [vmem:[%s1282_s1 + $0x30] sm:$0xff]  ;;  %v958_v4 = vld [vmem:[%s1282_s1 + $0x28] sm:$0xff]  ;;  %s1291_s5 = smov (!%p244_p4, %s801_s5), 47 }
   0xd   : > { %v968_v1 = vld [vmem:[%s1282_s1 + $0x78] sm:$0xff]  ;;  %493 = vmatpush.bf16.msra.mxu0 %v960_v0  ;;  %1016 = vmatpush.bf16.msra.mxu2 %v960_v0  ;;  %v967_v3 = vld [vmem:[%s1282_s1 + $0x70] sm:$0xff]  ;;  %v966_v5 = vld [vmem:[%s1282_s1 + $0x68] sm:$0xff]  ;;  %s936_s21 = sshll.u32 %s1291_s5, 3  ;;  %s805_s12 = sshll.u32 %s1291_s5, 2 }
   0xe   : > { %542 = vmatpush.bf16.msra.mxu1 %v968_v1  ;;  %1024 = vmatpush.bf16.msra.mxu3 %v968_v1  ;;  %v957_v6 = vld [vmem:[%s1282_s1 + $0x20] sm:$0xff]  ;;  %v956_v8 = vld [vmem:[%s1282_s1 + $0x18] sm:$0xff]  ;;  %v955_v10 = vld [vmem:[%s1282_s1 + $0x10] sm:$0xff]  ;;  %s1173_s26 = scalar_lea.vmem %s1281_s0, %s936_s21  ;;  %s1235_s15 = scalar_lea.vmem %s1285_s4, %s805_s12 }
   0xf   : > { %v965_v7 = vld [vmem:[%s1282_s1 + $0x60] sm:$0xff]  ;;  %v964_v9 = vld [vmem:[%s1282_s1 + $0x58] sm:$0xff]  ;;  %v963_v11 = vld [vmem:[%s1282_s1 + $0x50] sm:$0xff] }
  0x10   : > { %v954_v12 = vld [vmem:[%s1282_s1 + $0x8] sm:$0xff]  ;;  %v953_v14 = vld [vmem:[%s1282_s1] sm:$0xff]  ;;  %v816_v28 = vld [vmem:[%s1173_s26 + $0x10] sm:$0xf] }
  0x11   : > { %494 = vmatpush.bf16.msra.mxu0 %v959_v2  ;;  %1017 = vmatpush.bf16.msra.mxu2 %v959_v2  ;;  %v962_v13 = vld [vmem:[%s1282_s1 + $0x48] sm:$0xff]  ;;  %v961_v15 = vld [vmem:[%s1282_s1 + $0x40] sm:$0xff]  ;;  %v940_v29 = vld [vmem:[%s1173_s26 + $0x14] sm:$0xf0] }
  0x12   : > { %543 = vmatpush.bf16.msra.mxu1 %v967_v3  ;;  %1025 = vmatpush.bf16.msra.mxu3 %v967_v3  ;;  %v808_v16 = vld [vmem:[%s1173_s26] sm:$0xf]  ;;  %v938_v17 = vld [vmem:[%s1173_s26 + $0x4] sm:$0xf0]  ;;  %v937_v20 = vld [vmem:[%s1173_s26 + $0x4] sm:$0xf]  ;;  %v817_v36 = vor.u32 %v940_v29, %v816_v28 }
  0x13   : > { %v840_v18 = vld [vmem:[%s1173_s26 + $0x40] sm:$0xf]  ;;  %v946_v19 = vld [vmem:[%s1173_s26 + $0x44] sm:$0xf0]  ;;  %v810_v21 = vld [vmem:[%s1173_s26 + $0x8] sm:$0xf0]  ;;  %v809_v24 = vor.u32 %v938_v17, %v808_v16 }
  0x14   : > { %v945_v22 = vld [vmem:[%s1173_s26 + $0x44] sm:$0xf]  ;;  %v842_v23 = vld [vmem:[%s1173_s26 + $0x48] sm:$0xf0]  ;;  %v841_v25 = vor.u32 %v946_v19, %v840_v18  ;;  %v813_v26 = vor.u32 %v937_v20, %v810_v21  ;;  %v848_v30 = vld [vmem:[%s1173_s26 + $0x50] sm:$0xf] }
  0x15   : > { %495 = vmatpush.bf16.msra.mxu0 %v958_v4  ;;  %1018 = vmatpush.bf16.msra.mxu2 %v958_v4  ;;  %v845_v27 = vor.u32 %v945_v22, %v842_v23  ;;  %v948_v31 = vld [vmem:[%s1173_s26 + $0x54] sm:$0xf0]  ;;  %v939_v32 = vld [vmem:[%s1173_s26 + $0x14] sm:$0xf]  ;;  %v818_v33 = vld [vmem:[%s1173_s26 + $0x18] sm:$0xf0] }
  0x16   : > { %544 = vmatpush.bf16.msra.mxu1 %v966_v5  ;;  %1026 = vmatpush.bf16.msra.mxu3 %v966_v5  ;;  %v947_v34 = vld [vmem:[%s1173_s26 + $0x54] sm:$0xf]  ;;  %v850_v35 = vld [vmem:[%s1173_s26 + $0x58] sm:$0xf0]  ;;  %v849_v37 = vor.u32 %v948_v31, %v848_v30  ;;  %v821_v38 = vor.u32 %v939_v32, %v818_v33  ;;  %v824_v40 = vld [vmem:[%s1173_s26 + $0x20] sm:$0xf] }
  0x17   : > { %v853_v39 = vor.u32 %v947_v34, %v850_v35  ;;  %v942_v41 = vld [vmem:[%s1173_s26 + $0x24] sm:$0xf0]  ;;  %v856_v42 = vld [vmem:[%s1173_s26 + $0x60] sm:$0xf]  ;;  %v941_v44 = vld [vmem:[%s1173_s26 + $0x24] sm:$0xf] }
  0x18   : > { %v950_v43 = vld [vmem:[%s1173_s26 + $0x64] sm:$0xf0]  ;;  %v826_v45 = vld [vmem:[%s1173_s26 + $0x28] sm:$0xf0]  ;;  %v949_v46 = vld [vmem:[%s1173_s26 + $0x64] sm:$0xf]  ;;  %v825_v48 = vor.u32 %v942_v41, %v824_v40 }
  0x19   : > { %496 = vmatpush.bf16.msra.mxu0 %v957_v6  ;;  %1019 = vmatpush.bf16.msra.mxu2 %v957_v6  ;;  %v858_v47 = vld [vmem:[%s1173_s26 + $0x68] sm:$0xf0]  ;;  %v857_v49 = vor.u32 %v950_v43, %v856_v42  ;;  %v829_v50 = vor.u32 %v941_v44, %v826_v45  ;;  %v832_v52 = vld [vmem:[%s1173_s26 + $0x30] sm:$0xf]  ;;  %v944_v53 = vld [vmem:[%s1173_s26 + $0x34] sm:$0xf0] }
  0x1a   : > { %545 = vmatpush.bf16.msra.mxu1 %v965_v7  ;;  %1027 = vmatpush.bf16.msra.mxu3 %v965_v7  ;;  %v861_v51 = vor.u32 %v949_v46, %v858_v47  ;;  %v864_v54 = vld [vmem:[%s1173_s26 + $0x70] sm:$0xf]  ;;  %v952_v55 = vld [vmem:[%s1173_s26 + $0x74] sm:$0xf0]  ;;  %v943_v56 = vld [vmem:[%s1173_s26 + $0x34] sm:$0xf]  ;;  %v833_v60 = vor.u32 %v944_v53, %v832_v52 }
  0x1b   : > { %v834_v57 = vld [vmem:[%s1173_s26 + $0x38] sm:$0xf0]  ;;  %v951_v58 = vld [vmem:[%s1173_s26 + $0x74] sm:$0xf]  ;;  %v865_v61 = vor.u32 %v952_v55, %v864_v54  ;;  %v1219_v3 = vld [vmem:[%s1283_s2] ss:$0 sm:$0xff] }
  0x1c   : > { %v866_v59 = vld [vmem:[%s1173_s26 + $0x78] sm:$0xf0]  ;;  %v837_v62 = vor.u32 %v943_v56, %v834_v57  ;;  %v1225_v7 = vld [vmem:[%s1284_s3] ss:$0 sm:$0xff] }
  0x1d   : > { %497 = vmatpush.bf16.msra.mxu0 %v956_v8  ;;  %1020 = vmatpush.bf16.msra.mxu2 %v956_v8  ;;  %v869_v63 = vor.u32 %v951_v58, %v866_v59 }
  0x1e   : > { %546 = vmatpush.bf16.msra.mxu1 %v964_v9  ;;  %1028 = vmatpush.bf16.msra.mxu3 %v964_v9 }
  0x21   : > { %498 = vmatpush.bf16.msra.mxu0 %v955_v10  ;;  %1021 = vmatpush.bf16.msra.mxu2 %v955_v10 }
  0x22   : > { %547 = vmatpush.bf16.msra.mxu1 %v963_v11  ;;  %1029 = vmatpush.bf16.msra.mxu3 %v963_v11 }
  0x25   : > { %499 = vmatpush.bf16.msra.mxu0 %v954_v12  ;;  %1022 = vmatpush.bf16.msra.mxu2 %v954_v12 }
  0x26   : > { %548 = vmatpush.bf16.msra.mxu1 %v962_v13  ;;  %1030 = vmatpush.bf16.msra.mxu3 %v962_v13 }
  0x29   : > { %500 = vmatpush.bf16.msra.mxu0 %v953_v14  ;;  %1023 = vmatpush.bf16.msra.mxu2 %v953_v14 }
  0x2a   : > { %549 = vmatpush.bf16.msra.mxu1 %v961_v15  ;;  %1031 = vmatpush.bf16.msra.mxu3 %v961_v15 }
  0x2c   : > { %501 = vmatmul.bf16.vlgmr.msra.gmra.mxu0 %v809_v24  ;;  %521 = vmatmul.bf16.vlgmr.msra.gmra.mxu2 %v841_v25 }
  0x2d   : > { %550 = vmatmul.bf16.vlgmr.msra.gmra.mxu1 %v813_v26  ;;  %570 = vmatmul.bf16.vlgmr.msra.gmra.mxu3 %v845_v27 }
  0x3c   : > { %506 = vmatmul.bf16.gmra.mxu0 %v817_v36  ;;  %526 = vmatmul.bf16.gmra.mxu2 %v849_v37 }
  0x3d   : > { %555 = vmatmul.bf16.gmra.mxu1 %v821_v38  ;;  %575 = vmatmul.bf16.gmra.mxu3 %v853_v39 }
  0x4c   : > { %511 = vmatmul.bf16.gmra.mxu0 %v825_v48  ;;  %531 = vmatmul.bf16.gmra.mxu2 %v857_v49 }
  0x4d   : > { %560 = vmatmul.bf16.gmra.mxu1 %v829_v50  ;;  %580 = vmatmul.bf16.gmra.mxu3 %v861_v51 }
  0x5c   : > { %516 = vmatmul.bf16.gmra.mxu0 %v833_v60  ;;  %536 = vmatmul.bf16.gmra.mxu2 %v865_v61 }
  0x5d   : > { %565 = vmatmul.bf16.gmra.mxu1 %v837_v62  ;;  %585 = vmatmul.bf16.gmra.mxu3 %v869_v63 }
  0xa9   : > { %v502_v0 = vpop.f32.mrf.mxu0 }
  0xaa   : > { %v551_v1 = vpop.f32.mrf.mxu1 }
  0xab   : > { %v552_v2 = vadd.f32 %v551_v1, %v502_v0 }
  0xad   : > { %v595_v6 = vmul.f32 %v1219_v3, %v552_v2 }
  0xaf   : > { %v522_v4 = vpop.f32.mrf.mxu2  ;;  %v615_v12 = vadd.f32 %v1225_v7, %v595_v6 }
  0xb0   : > { %v571_v5 = vpop.f32.mrf.mxu3 }
  0xb1   : > { %v504_v8 = vpop.f32.mrf.mxu0  ;;  %v572_v10 = vadd.f32 %v571_v5, %v522_v4  ;;  %v631_v18 = vmax.f32 %v615_v12, 0.0 }
  0xb2   : > { %v553_v9 = vpop.f32.mrf.mxu1 }
  0xb3   : > { %v554_v11 = vadd.f32 %v553_v9, %v504_v8  ;;  %v603_v14 = vmul.f32 %v1219_v3, %v572_v10 }
  0xb5   : > { %v596_v13 = vmul.f32 %v1219_v3, %v554_v11  ;;  %v623_v23 = vadd.f32 %v1225_v7, %v603_v14 }
  0xb7   : > { %v616_v15 = vadd.f32 %v1225_v7, %v596_v13  ;;  %v524_v16 = vpop.f32.mrf.mxu2  ;;  %v639_v28 = vmax.f32 %v623_v23, 0.0 }
  0xb8   : > { %v573_v17 = vpop.f32.mrf.mxu3 }
  0xb9   : > { %v632_v19 = vmax.f32 %v616_v15, 0.0  ;;  %v574_v20 = vadd.f32 %v573_v17, %v524_v16  ;;  %v507_v21 = vpop.f32.mrf.mxu0 }
  0xba   : > { %v556_v22 = vpop.f32.mrf.mxu1 }
  0xbb   : > { %v972_v24 = vpack.c.bf16 %v632_v19, %v631_v18  ;;  %v604_v25 = vmul.f32 %v1219_v3, %v574_v20  ;;  %v557_v27 = vadd.f32 %v556_v22, %v507_v21 }
  0xbd   : > { %973 = vst [vmem:[%s1235_s15] sm:$0xff] %v972_v24   ;;  %v624_v26 = vadd.f32 %v1225_v7, %v604_v25  ;;  %v597_v33 = vmul.f32 %v1219_v3, %v557_v27 }
  0xbf   : > { %v640_v29 = vmax.f32 %v624_v26, 0.0  ;;  %v527_v30 = vpop.f32.mrf.mxu2  ;;  %v617_v38 = vadd.f32 %v1225_v7, %v597_v33 }
  0xc0   : > { %v576_v31 = vpop.f32.mrf.mxu3 }
  0xc1   : > { %v992_v32 = vpack.c.bf16 %v640_v29, %v639_v28  ;;  %v509_v34 = vpop.f32.mrf.mxu0  ;;  %v577_v36 = vadd.f32 %v576_v31, %v527_v30  ;;  %v633_v44 = vmax.f32 %v617_v38, 0.0 }
  0xc2   : > { %v558_v35 = vpop.f32.mrf.mxu1 }
  0xc3   : > { %1012 = vst [vmem:[%s1235_s15 + $0x20] sm:$0xff] %v992_v32   ;;  %v559_v37 = vadd.f32 %v558_v35, %v509_v34  ;;  %v605_v40 = vmul.f32 %v1219_v3, %v577_v36 }
  0xc5   : > { %v598_v39 = vmul.f32 %v1219_v3, %v559_v37  ;;  %v625_v49 = vadd.f32 %v1225_v7, %v605_v40 }
  0xc7   : > { %v618_v41 = vadd.f32 %v1225_v7, %v598_v39  ;;  %v529_v42 = vpop.f32.mrf.mxu2  ;;  %v641_v54 = vmax.f32 %v625_v49, 0.0 }
  0xc8   : > { %v578_v43 = vpop.f32.mrf.mxu3 }
  0xc9   : > { %v634_v45 = vmax.f32 %v618_v41, 0.0  ;;  %v579_v46 = vadd.f32 %v578_v43, %v529_v42  ;;  %v512_v47 = vpop.f32.mrf.mxu0 }
  0xca   : > { %v561_v48 = vpop.f32.mrf.mxu1 }
  0xcb   : > { %v977_v50 = vpack.c.bf16 %v634_v45, %v633_v44  ;;  %v606_v51 = vmul.f32 %v1219_v3, %v579_v46  ;;  %v562_v53 = vadd.f32 %v561_v48, %v512_v47 }
  0xcd   : > { %1009 = vst [vmem:[%s1235_s15 + $0x8] sm:$0xff] %v977_v50   ;;  %v626_v52 = vadd.f32 %v1225_v7, %v606_v51  ;;  %v599_v59 = vmul.f32 %v1219_v3, %v562_v53 }
  0xcf   : > { %v642_v55 = vmax.f32 %v626_v52, 0.0  ;;  %v532_v56 = vpop.f32.mrf.mxu2  ;;  %v619_v0 = vadd.f32 %v1225_v7, %v599_v59 }
  0xd0   : > { %v581_v57 = vpop.f32.mrf.mxu3 }
  0xd1   : > { %v997_v58 = vpack.c.bf16 %v642_v55, %v641_v54  ;;  %v514_v60 = vpop.f32.mrf.mxu0  ;;  %v582_v62 = vadd.f32 %v581_v57, %v532_v56  ;;  %v635_v8 = vmax.f32 %v619_v0, 0.0 }
  0xd2   : > { %v563_v61 = vpop.f32.mrf.mxu1 }
  0xd3   : > { %1013 = vst [vmem:[%s1235_s15 + $0x28] sm:$0xff] %v997_v58   ;;  %v564_v63 = vadd.f32 %v563_v61, %v514_v60  ;;  %v607_v2 = vmul.f32 %v1219_v3, %v582_v62 }
  0xd5   : > { %v600_v1 = vmul.f32 %v1219_v3, %v564_v63  ;;  %v627_v13 = vadd.f32 %v1225_v7, %v607_v2 }
  0xd7   : > { %v620_v4 = vadd.f32 %v1225_v7, %v600_v1  ;;  %v534_v5 = vpop.f32.mrf.mxu2  ;;  %v643_v18 = vmax.f32 %v627_v13, 0.0 }
  0xd8   : > { %v583_v6 = vpop.f32.mrf.mxu3 }
  0xd9   : > { %v636_v9 = vmax.f32 %v620_v4, 0.0  ;;  %v584_v10 = vadd.f32 %v583_v6, %v534_v5  ;;  %v517_v11 = vpop.f32.mrf.mxu0 }
  0xda   : > { %v566_v12 = vpop.f32.mrf.mxu1 }
  0xdb   : > { %v982_v14 = vpack.c.bf16 %v636_v9, %v635_v8  ;;  %v608_v15 = vmul.f32 %v1219_v3, %v584_v10  ;;  %v567_v17 = vadd.f32 %v566_v12, %v517_v11 }
  0xdd   : > { %1010 = vst [vmem:[%s1235_s15 + $0x10] sm:$0xff] %v982_v14   ;;  %v628_v16 = vadd.f32 %v1225_v7, %v608_v15  ;;  %v601_v23 = vmul.f32 %v1219_v3, %v567_v17 }
  0xdf   : > { %v644_v19 = vmax.f32 %v628_v16, 0.0  ;;  %v537_v20 = vpop.f32.mrf.mxu2  ;;  %v621_v28 = vadd.f32 %v1225_v7, %v601_v23 }
  0xe0   : > { %v586_v21 = vpop.f32.mrf.mxu3 }
  0xe1   : > { %v1002_v22 = vpack.c.bf16 %v644_v19, %v643_v18  ;;  %v519_v24 = vpop.f32.mrf.mxu0  ;;  %v587_v26 = vadd.f32 %v586_v21, %v537_v20  ;;  %v637_v34 = vmax.f32 %v621_v28, 0.0 }
  0xe2   : > { %v568_v25 = vpop.f32.mrf.mxu1 }
  0xe3   : > { %1014 = vst [vmem:[%s1235_s15 + $0x30] sm:$0xff] %v1002_v22   ;;  %v569_v27 = vadd.f32 %v568_v25, %v519_v24  ;;  %v609_v30 = vmul.f32 %v1219_v3, %v587_v26 }
  0xe5   : > { %v602_v29 = vmul.f32 %v1219_v3, %v569_v27  ;;  %v629_v37 = vadd.f32 %v1225_v7, %v609_v30 }
  0xe7   : > { %v622_v31 = vadd.f32 %v1225_v7, %v602_v29  ;;  %v539_v32 = vpop.f32.mrf.mxu2  ;;  %v645_v41 = vmax.f32 %v629_v37, 0.0 }
  0xe8   : > { %v588_v33 = vpop.f32.mrf.mxu3 }
  0xe9   : > { %v638_v35 = vmax.f32 %v622_v31, 0.0  ;;  %v589_v36 = vadd.f32 %v588_v33, %v539_v32 }
  0xeb   : > { %v987_v38 = vpack.c.bf16 %v638_v35, %v637_v34  ;;  %v610_v39 = vmul.f32 %v1219_v3, %v589_v36 }
  0xed   : > { %1011 = vst [vmem:[%s1235_s15 + $0x18] sm:$0xff] %v987_v38   ;;  %v630_v40 = vadd.f32 %v1225_v7, %v610_v39 }
  0xef   : > { %v646_v42 = vmax.f32 %v630_v40, 0.0 }
  0xf1   : > { %v1007_v43 = vpack.c.bf16 %v646_v42, %v645_v41 }
  0xf3   : > { %1015 = vst [vmem:[%s1235_s15 + $0x38] sm:$0xff] %v1007_v43  }
  0xf4 PF: > { %s14_s17 = sadd.s32 1, %s1080_s17   ;;  %s1286_s15 = smov %s1076_s16 }
  0xf5   : > { %p11_p5 = scmp.ge.s32.totalorder %s14_s17, 5   ;;  %s1287_s16 = smov %s1289_s18 }
  0xf7   :  { %13 = sbr.rel (!%p11_p5) target bundleno = 2 (0x2), region = 75 }

</bundles_post_ra>
